<compile_context>
chip_gen: v7x
topology: tpu7x:2x2x1
jax: 0.10.0
libtpu: 0.0.40
codegen_flags: <defaults>
</compile_context>

<pallas_src>
import jax
import jax.numpy as jnp
from jax.experimental import pallas as pl
from jax.experimental.pallas import tpu as pltpu


def region_deepmil_kernel(
    x_ref,        # [TB, C, HW]   bf16  instance tile of the bag
    wenc_ref,     # [C, Ep]       bf16  encoder projection, pre-scaled by 1/HW
    benc_ref,     # [1, Ep]       f32
    wfc_ref,      # [Ep, Dp]      bf16  fc1
    bfc_ref,      # [1, Dp]       f32
    vu_ref,       # [Dp, 2*Lp]    bf16  fused attention V|U
    watt_ref,     # [1, Lp]       bf16  attention score head (row layout)
    wdec_ref,     # [Dp, Kp]      bf16  decoder
    bdec_ref,     # [1, Kp]       f32
    logits_ref,   # [1, Kp]       f32   output (written on last step)
    a_ref,        # [nB, TB]      f32   output attention weights (lane-dense)
    m_scr,        # [1, 1]        f32   running max
    l_scr,        # [1, 1]        f32   running softmax denominator
    acc_scr,      # [1, Dp]       f32   running attention-weighted sum of z2
    s_scr,        # [nB, TB]      f32   raw scores (for the A output)
):
    i = pl.program_id(0)
    n_steps = pl.num_programs(0)
    lp = watt_ref.shape[1]

    @pl.when(i == 0)
    def _init():
        m_scr[...] = jnp.full(m_scr.shape, -jnp.inf, jnp.float32)
        l_scr[...] = jnp.zeros(l_scr.shape, jnp.float32)
        acc_scr[...] = jnp.zeros(acc_scr.shape, jnp.float32)

    # ---- encoder: global average pool (1/HW folded into wenc) + linear ----
    x = x_ref[...]                                                # [TB, C, HW] bf16
    pooled = jnp.sum(x, axis=-1, dtype=jnp.float32)               # [TB, C] f32 accumulation
    z1 = jnp.dot(pooled.astype(jnp.bfloat16), wenc_ref[...],
                 preferred_element_type=jnp.float32) + benc_ref[...]      # [TB, Ep]

    # ---- fc1: Linear + ReLU ----
    z2 = jnp.dot(z1.astype(jnp.bfloat16), wfc_ref[...],
                 preferred_element_type=jnp.float32) + bfc_ref[...]       # [TB, Dp]
    z2 = jnp.maximum(z2, 0.0)

    # ---- gated attention: one fused matmul, then tanh/sigmoid halves ----
    hg = jnp.dot(z2.astype(jnp.bfloat16), vu_ref[...],
                 preferred_element_type=jnp.float32)                      # [TB, 2*Lp]
    gate = jnp.tanh(hg[:, :lp]) * jax.nn.sigmoid(hg[:, lp:])              # [TB, Lp] f32

    # ---- attention scores as a lane-dense [1, TB] row (contract Lp on MXU) ----
    s_row = jax.lax.dot_general(
        watt_ref[...], gate.astype(jnp.bfloat16),
        dimension_numbers=(((1,), (1,)), ((), ())),
        preferred_element_type=jnp.float32)                               # [1, TB]

    # stash raw scores for the final attention-weight output
    s_scr[pl.ds(i, 1), :] = s_row

    # ---- online (flash-style) softmax over instances, carried in VMEM ----
    m_prev = m_scr[...]                                                   # [1, 1]
    m_new = jnp.maximum(m_prev, jnp.max(s_row, axis=-1, keepdims=True))   # [1, 1]
    alpha = jnp.exp(m_prev - m_new)                                       # [1, 1]
    p = jnp.exp(s_row - m_new)                                            # [1, TB]
    l_scr[...] = alpha * l_scr[...] + jnp.sum(p, axis=-1, keepdims=True)
    acc_scr[...] = alpha * acc_scr[...] + jnp.dot(                        # MXU pool
        p.astype(jnp.bfloat16), z2.astype(jnp.bfloat16),
        preferred_element_type=jnp.float32)                               # [1, Dp]
    m_scr[...] = m_new

    # ---- finalize on the last instance tile ----
    @pl.when(i == n_steps - 1)
    def _finalize():
        inv_l = pl.reciprocal(l_scr[...], approx=True)       # EUP
        inv_l = inv_l * (2.0 - l_scr[...] * inv_l)           # one Newton step -> f32 accuracy
        z3 = acc_scr[...] * inv_l                            # [1, Dp]
        logits_ref[...] = jnp.dot(z3.astype(jnp.bfloat16), wdec_ref[...],
                                  preferred_element_type=jnp.float32) + bdec_ref[...]
        a_ref[...] = jnp.exp(s_scr[...] - m_scr[...]) * inv_l             # [nB, TB]


def _round_up(x, m):
    return ((x + m - 1) // m) * m


def _pad2(a, rows, cols):
    return jnp.pad(a, ((0, rows - a.shape[0]), (0, cols - a.shape[1])))


def _choose_tb(B, max_tb=128):
    # Largest divisor of B that is <= max_tb.  At Phikon scale prefer ~32-64 on
    # v7x (64 MiB VMEM) and up to ~128 on v5e/v6e.
    for t in range(min(B, max_tb), 0, -1):
        if B % t == 0:
            return t
    return B


def region_deepmil_phikon_forward(x_nchw, params, tb=None):
    """x_nchw: [B, C, H, W] float32.  Returns (logits [1, K], A [1, B])."""
    B, C, H, W = x_nchw.shape
    HW = H * W
    x = x_nchw.reshape(B, C, HW).astype(jnp.bfloat16)   # glue reshape + bf16 (halves DMA/VMEM)

    E = params["w_enc"].shape[1]
    D = params["w_fc"].shape[1]
    L = params["v"].shape[1]
    K = params["w_dec"].shape[1]
    Ep, Dp, Lp, Kp = (_round_up(d, 128) for d in (E, D, L, K))

    # Fold the 1/HW GAP scale into w_enc; zero-pad every weight N-dim to 128 lanes
    # (exact: padded columns are identically zero through the whole network).
    w_enc = _pad2(params["w_enc"] / HW, C, Ep).astype(jnp.bfloat16)
    b_enc = _pad2(params["b_enc"], 1, Ep)
    w_fc = _pad2(params["w_fc"], Ep, Dp).astype(jnp.bfloat16)
    b_fc = _pad2(params["b_fc"], 1, Dp)
    vu = jnp.concatenate(
        [_pad2(params["v"], Dp, Lp), _pad2(params["u"], Dp, Lp)], axis=1
    ).astype(jnp.bfloat16)
    w_att = _pad2(params["w"].reshape(1, L), 1, Lp).astype(jnp.bfloat16)
    w_dec = _pad2(params["w_dec"], Dp, Kp).astype(jnp.bfloat16)
    b_dec = _pad2(params["b_dec"], 1, Kp)

    if tb is None:
        tb = _choose_tb(B)
    assert B % tb == 0, "instance tile must divide bag size (see TODO on masking)"
    nb = B // tb

    # Rough VMEM estimate; only raise the scoped limit when actually needed.
    x_tile_bytes = tb * C * HW * 2
    w_bytes = sum(int(a.size) * a.dtype.itemsize
                  for a in (w_enc, b_enc, w_fc, b_fc, vu, w_att, w_dec, b_dec))
    est_vmem = 6 * x_tile_bytes + 2 * w_bytes          # dbl-buffered x + f32 temps + weights
    cp_kwargs = dict(dimension_semantics=("arbitrary",))
    if est_vmem > 32 * 1024 * 1024:
        cp_kwargs["vmem_limit_bytes"] = min(100 * 1024 * 1024, est_vmem + (16 << 20))

    logits_p, a_tiles = pl.pallas_call(
        region_deepmil_kernel,
        grid=(nb,),
        in_specs=[
            pl.BlockSpec((tb, C, HW), lambda i: (i, 0, 0)),   # streamed instance tiles
            pl.BlockSpec((C, Ep), lambda i: (0, 0)),          # weights: resident
            pl.BlockSpec((1, Ep), lambda i: (0, 0)),
            pl.BlockSpec((Ep, Dp), lambda i: (0, 0)),
            pl.BlockSpec((1, Dp), lambda i: (0, 0)),
            pl.BlockSpec((Dp, 2 * Lp), lambda i: (0, 0)),
            pl.BlockSpec((1, Lp), lambda i: (0, 0)),
            pl.BlockSpec((Dp, Kp), lambda i: (0, 0)),
            pl.BlockSpec((1, Kp), lambda i: (0, 0)),
        ],
        out_specs=[
            pl.BlockSpec((1, Kp), lambda i: (0, 0)),
            pl.BlockSpec((nb, tb), lambda i: (0, 0)),
        ],
        out_shape=[
            jax.ShapeDtypeStruct((1, Kp), jnp.float32),
            jax.ShapeDtypeStruct((nb, tb), jnp.float32),
        ],
        scratch_shapes=[
            pltpu.VMEM((1, 1), jnp.float32),      # running max
            pltpu.VMEM((1, 1), jnp.float32),      # running denom
            pltpu.VMEM((1, Dp), jnp.float32),     # running weighted z2
            pltpu.VMEM((nb, tb), jnp.float32),    # raw scores
        ],
        compiler_params=pltpu.CompilerParams(**cp_kwargs),
    )(x, w_enc, b_enc, w_fc, b_fc, vu, w_att, w_dec, b_dec)

    logits = logits_p[:, :K]              # drop zero-padded classes (glue slice)
    A = a_tiles.reshape(1, B)             # row-major (nB, TB) -> (1, B); no transpose needed
    return logits, A


def _reference_forward(x_nchw, params):
    """Pure-JAX f32 reference of the same forward (for a loose sanity check)."""
    B, C, H, W = x_nchw.shape
    pooled = x_nchw.reshape(B, C, H * W).mean(-1)
    z1 = pooled @ params["w_enc"] + params["b_enc"]
    z2 = jnp.maximum(z1 @ params["w_fc"] + params["b_fc"], 0.0)
    gate = jnp.tanh(z2 @ params["v"]) * jax.nn.sigmoid(z2 @ params["u"])
    s = gate @ params["w"]                        # [B, 1]
    a = jax.nn.softmax(s, axis=0)                 # [B, 1]
    z3 = (a * z2).sum(0, keepdims=True)           # [1, D]
    logits = z3 @ params["w_dec"] + params["b_dec"]
    return logits, a.T


def init_params(key, C, E, D, L, K):
    ks = jax.random.split(key, 8)
    scale = 0.1
    return {
        "w_enc": scale * jax.random.normal(ks[0], (C, E), jnp.float32),
        "b_enc": scale * jax.random.normal(ks[1], (1, E), jnp.float32),
        "w_fc": scale * jax.random.normal(ks[2], (E, D), jnp.float32),
        "b_fc": scale * jax.random.normal(ks[3], (1, D), jnp.float32),
        "v": scale * jax.random.normal(ks[4], (D, L), jnp.float32),
        "u": scale * jax.random.normal(ks[5], (D, L), jnp.float32),
        "w": scale * jax.random.normal(ks[6], (L, 1), jnp.float32),
        "w_dec": scale * jax.random.normal(ks[7], (D, K), jnp.float32),
        "b_dec": jnp.zeros((1, K), jnp.float32),
    }


if __name__ == "__main__":
    # Small shapes consistent with the forward contract:
    #   bag of region tiles: [B=16, C=4, H=16, W=16]
    B, C, H, W = 16, 4, 16, 16
    E, D, L, K = 32, 32, 16, 2  # embed_dim, d_model, attention hidden, n_classes

    key = jax.random.PRNGKey(0)
    k_x, k_p = jax.random.split(key)
    x = jax.random.normal(k_x, (B, C, H, W), jnp.float32)
    params = init_params(k_p, C, E, D, L, K)

    # tb=8 -> 2 grid steps, deliberately exercising the tiled online-softmax path.
    logits, A = region_deepmil_phikon_forward(x, params, tb=8)
    jax.block_until_ready((logits, A))

    assert logits.shape == (1, K)
    assert A.shape == (1, B)
    # attention weights must softmax to 1 over instances
    assert abs(float(jnp.sum(A)) - 1.0) < 1e-4

    # loose check against the f32 reference (kernel uses bf16 matmul operands)
    ref_logits, ref_A = _reference_forward(x, params)
    assert float(jnp.max(jnp.abs(logits - ref_logits))) < 1e-2
    assert float(jnp.max(jnp.abs(A - ref_A))) < 2e-3

    print("KERNEL_OK")
</pallas_src>

<mosaic_0001>
module attributes {stable_mosaic.version = 11 : i64} {
  func.func @region_deepmil_kernel(%arg0: i32, %arg1: memref<8x4x256xbf16, #tpu.memory_space<vmem>>, %arg2: memref<4x128xbf16, #tpu.memory_space<vmem>>, %arg3: memref<1x128xf32, #tpu.memory_space<vmem>>, %arg4: memref<128x128xbf16, #tpu.memory_space<vmem>>, %arg5: memref<1x128xf32, #tpu.memory_space<vmem>>, %arg6: memref<128x256xbf16, #tpu.memory_space<vmem>>, %arg7: memref<1x128xbf16, #tpu.memory_space<vmem>>, %arg8: memref<128x128xbf16, #tpu.memory_space<vmem>>, %arg9: memref<1x128xf32, #tpu.memory_space<vmem>>, %arg10: memref<1x128xf32, #tpu.memory_space<vmem>>, %arg11: memref<2x8xf32, #tpu.memory_space<vmem>>, %arg12: memref<1x1xf32, #tpu.memory_space<vmem>>, %arg13: memref<1x1xf32, #tpu.memory_space<vmem>>, %arg14: memref<1x128xf32, #tpu.memory_space<vmem>>, %arg15: memref<2x8xf32, #tpu.memory_space<vmem>>) attributes {dimension_semantics = [#tpu.dimension_semantics<arbitrary>], iteration_bounds = array<i64: 2>, scalar_prefetch = 0 : i64, scratch_operands = 4 : i64, tpu.core_type = #tpu.core_type<tc>, window_params = [{transform_indices = @transform_0, window_bounds = array<i64: 8, 4, 256>}, {pipeline_mode = #tpu.pipeline_mode<synchronous>, transform_indices = @transform_1, window_bounds = array<i64: 4, 128>}, {pipeline_mode = #tpu.pipeline_mode<synchronous>, transform_indices = @transform_2, window_bounds = array<i64: 1, 128>}, {pipeline_mode = #tpu.pipeline_mode<synchronous>, transform_indices = @transform_3, window_bounds = array<i64: 128, 128>}, {pipeline_mode = #tpu.pipeline_mode<synchronous>, transform_indices = @transform_4, window_bounds = array<i64: 1, 128>}, {pipeline_mode = #tpu.pipeline_mode<synchronous>, transform_indices = @transform_5, window_bounds = array<i64: 128, 256>}, {pipeline_mode = #tpu.pipeline_mode<synchronous>, transform_indices = @transform_6, window_bounds = array<i64: 1, 128>}, {pipeline_mode = #tpu.pipeline_mode<synchronous>, transform_indices = @transform_7, window_bounds = array<i64: 128, 128>}, {pipeline_mode = #tpu.pipeline_mode<synchronous>, transform_indices = @transform_8, window_bounds = array<i64: 1, 128>}, {pipeline_mode = #tpu.pipeline_mode<synchronous>, transform_indices = @transform_9, window_bounds = array<i64: 1, 128>}, {pipeline_mode = #tpu.pipeline_mode<synchronous>, transform_indices = @transform_10, window_bounds = array<i64: 2, 8>}]} {
    %c0_i32 = arith.constant 0 : i32
    %0 = arith.cmpi eq, %arg0, %c0_i32 : i32
    %1 = arith.extui %0 : i1 to i32
    %c0_i32_0 = arith.constant 0 : i32
    %2 = arith.cmpi ne, %1, %c0_i32_0 : i32
    scf.if %2 {
      %cst_38 = arith.constant 0xFF800000 : f32
      %64 = vector.broadcast %cst_38 : f32 to vector<1x1xf32>
      %c0_39 = arith.constant 0 : index
      %c0_40 = arith.constant 0 : index
      %65 = vector.load %arg12[%c0_39, %c0_40] : memref<1x1xf32, #tpu.memory_space<vmem>>, vector<1x1xf32>
      tpu.vector_store %arg12[%c0_39, %c0_40], %64 {strides = array<i32>} : memref<1x1xf32, #tpu.memory_space<vmem>>, vector<1x1xf32>,
      %cst_41 = arith.constant 0.000000e+00 : f32
      %66 = vector.broadcast %cst_41 : f32 to vector<1x1xf32>
      %c0_42 = arith.constant 0 : index
      %c0_43 = arith.constant 0 : index
      %67 = vector.load %arg13[%c0_42, %c0_43] : memref<1x1xf32, #tpu.memory_space<vmem>>, vector<1x1xf32>
      tpu.vector_store %arg13[%c0_42, %c0_43], %66 {strides = array<i32>} : memref<1x1xf32, #tpu.memory_space<vmem>>, vector<1x1xf32>,
      %cst_44 = arith.constant 0.000000e+00 : f32
      %68 = vector.broadcast %cst_44 : f32 to vector<1x128xf32>
      %c0_45 = arith.constant 0 : index
      %c0_46 = arith.constant 0 : index
      %69 = vector.load %arg14[%c0_45, %c0_46] : memref<1x128xf32, #tpu.memory_space<vmem>>, vector<1x128xf32>
      tpu.vector_store %arg14[%c0_45, %c0_46], %68 {strides = array<i32>} : memref<1x128xf32, #tpu.memory_space<vmem>>, vector<1x128xf32>,
    } else {
    }
    %c0 = arith.constant 0 : index
    %c0_1 = arith.constant 0 : index
    %c0_2 = arith.constant 0 : index
    %3 = vector.load %arg1[%c0, %c0_1, %c0_2] : memref<8x4x256xbf16, #tpu.memory_space<vmem>>, vector<8x4x256xbf16>
    %4 = arith.extf %3 : vector<8x4x256xbf16> to vector<8x4x256xf32>
    %cst = arith.constant dense<0.000000e+00> : vector<8x4xf32>
    %5 = vector.multi_reduction <add>, %4, %cst [2] : vector<8x4x256xf32> to vector<8x4xf32>
    %6 = arith.truncf %5 : vector<8x4xf32> to vector<8x4xbf16>
    %c0_3 = arith.constant 0 : index
    %c0_4 = arith.constant 0 : index
    %7 = vector.load %arg2[%c0_3, %c0_4] : memref<4x128xbf16, #tpu.memory_space<vmem>>, vector<4x128xbf16>
    %cst_5 = arith.constant dense<0.000000e+00> : vector<8x128xf32>
    %8 = tpu.matmul %6, %7, %cst_5 {dimension_numbers = #tpu.dot_dimension_numbers<[1], [0], [0], [1], [0, 0, 1, 1], [], []>} : vector<8x4xbf16>, vector<4x128xbf16>, vector<8x128xf32> -> vector<8x128xf32>
    %c0_6 = arith.constant 0 : index
    %c0_7 = arith.constant 0 : index
    %9 = vector.load %arg3[%c0_6, %c0_7] : memref<1x128xf32, #tpu.memory_space<vmem>>, vector<1x128xf32>
    %10 = vector.broadcast %9 : vector<1x128xf32> to vector<8x128xf32>
    %11 = arith.addf %8, %10 : vector<8x128xf32>
    %12 = arith.truncf %11 : vector<8x128xf32> to vector<8x128xbf16>
    %c0_8 = arith.constant 0 : index
    %c0_9 = arith.constant 0 : index
    %13 = vector.load %arg4[%c0_8, %c0_9] : memref<128x128xbf16, #tpu.memory_space<vmem>>, vector<128x128xbf16>
    %cst_10 = arith.constant dense<0.000000e+00> : vector<8x128xf32>
    %14 = tpu.matmul %12, %13, %cst_10 {dimension_numbers = #tpu.dot_dimension_numbers<[1], [0], [0], [1], [0, 0, 1, 1], [], []>} : vector<8x128xbf16>, vector<128x128xbf16>, vector<8x128xf32> -> vector<8x128xf32>
    %c0_11 = arith.constant 0 : index
    %c0_12 = arith.constant 0 : index
    %15 = vector.load %arg5[%c0_11, %c0_12] : memref<1x128xf32, #tpu.memory_space<vmem>>, vector<1x128xf32>
    %16 = vector.broadcast %15 : vector<1x128xf32> to vector<8x128xf32>
    %17 = arith.addf %14, %16 : vector<8x128xf32>
    %cst_13 = arith.constant 0.000000e+00 : f32
    %18 = vector.broadcast %cst_13 : f32 to vector<8x128xf32>
    %19 = arith.maximumf %17, %18 : vector<8x128xf32>
    %20 = arith.truncf %19 : vector<8x128xf32> to vector<8x128xbf16>
    %c0_14 = arith.constant 0 : index
    %c0_15 = arith.constant 0 : index
    %21 = vector.load %arg6[%c0_14, %c0_15] : memref<128x256xbf16, #tpu.memory_space<vmem>>, vector<128x256xbf16>
    %cst_16 = arith.constant dense<0.000000e+00> : vector<8x256xf32>
    %22 = tpu.matmul %20, %21, %cst_16 {dimension_numbers = #tpu.dot_dimension_numbers<[1], [0], [0], [1], [0, 0, 1, 1], [], []>} : vector<8x128xbf16>, vector<128x256xbf16>, vector<8x256xf32> -> vector<8x256xf32>
    %23 = vector.extract_strided_slice %22 {offsets = [0, 0], sizes = [8, 128], strides = [1, 1]} : vector<8x256xf32> to vector<8x128xf32>
    %24 = math.tanh %23 : vector<8x128xf32>
    %25 = vector.extract_strided_slice %22 {offsets = [0, 128], sizes = [8, 128], strides = [1, 1]} : vector<8x256xf32> to vector<8x128xf32>
    %26 = arith.negf %25 : vector<8x128xf32>
    %27 = math.exp %26 : vector<8x128xf32>
    %cst_17 = arith.constant 1.000000e+00 : f32
    %28 = vector.broadcast %cst_17 : f32 to vector<8x128xf32>
    %29 = arith.addf %28, %27 : vector<8x128xf32>
    %30 = arith.divf %28, %29 : vector<8x128xf32>
    %31 = arith.mulf %24, %30 : vector<8x128xf32>
    %c0_18 = arith.constant 0 : index
    %c0_19 = arith.constant 0 : index
    %32 = vector.load %arg7[%c0_18, %c0_19] : memref<1x128xbf16, #tpu.memory_space<vmem>>, vector<1x128xbf16>
    %33 = arith.truncf %31 : vector<8x128xf32> to vector<8x128xbf16>
    %cst_20 = arith.constant dense<0.000000e+00> : vector<1x8xf32>
    %34 = tpu.matmul %32, %33, %cst_20 {dimension_numbers = #tpu.dot_dimension_numbers<[1], [1], [0], [0], [0, 0, 1, 0], [], []>} : vector<1x128xbf16>, vector<8x128xbf16>, vector<1x8xf32> -> vector<1x8xf32>
    %35 = arith.index_cast %arg0 : i32 to index
    %c0_21 = arith.constant 0 : index
    %36 = vector.load %arg15[%35, %c0_21] : memref<2x8xf32, #tpu.memory_space<vmem>>, vector<1x8xf32>
    tpu.vector_store %arg15[%35, %c0_21], %34 {strides = array<i32>} : memref<2x8xf32, #tpu.memory_space<vmem>>, vector<1x8xf32>,
    %c0_22 = arith.constant 0 : index
    %c0_23 = arith.constant 0 : index
    %37 = vector.load %arg12[%c0_22, %c0_23] : memref<1x1xf32, #tpu.memory_space<vmem>>, vector<1x1xf32>
    %cst_24 = arith.constant dense<0xFF800000> : vector<1xf32>
    %38 = vector.multi_reduction <maximumf>, %34, %cst_24 [1] : vector<1x8xf32> to vector<1xf32>
    %39 = vector.shape_cast %38 : vector<1xf32> to vector<1x1xf32>
    %40 = arith.maximumf %37, %39 : vector<1x1xf32>
    %41 = arith.subf %37, %40 : vector<1x1xf32>
    %42 = math.exp %41 : vector<1x1xf32>
    %43 = vector.broadcast %40 : vector<1x1xf32> to vector<1x8xf32>
    %44 = arith.subf %34, %43 : vector<1x8xf32>
    %45 = math.exp %44 : vector<1x8xf32>
    %c0_25 = arith.constant 0 : index
    %c0_26 = arith.constant 0 : index
    %46 = vector.load %arg13[%c0_25, %c0_26] : memref<1x1xf32, #tpu.memory_space<vmem>>, vector<1x1xf32>
    %47 = arith.mulf %42, %46 : vector<1x1xf32>
    %cst_27 = arith.constant dense<0.000000e+00> : vector<1xf32>
    %48 = vector.multi_reduction <add>, %45, %cst_27 [1] : vector<1x8xf32> to vector<1xf32>
    %49 = vector.shape_cast %48 : vector<1xf32> to vector<1x1xf32>
    %50 = arith.addf %47, %49 : vector<1x1xf32>
    %c0_28 = arith.constant 0 : index
    %c0_29 = arith.constant 0 : index
    %51 = vector.load %arg13[%c0_28, %c0_29] : memref<1x1xf32, #tpu.memory_space<vmem>>, vector<1x1xf32>
    tpu.vector_store %arg13[%c0_28, %c0_29], %50 {strides = array<i32>} : memref<1x1xf32, #tpu.memory_space<vmem>>, vector<1x1xf32>,
    %c0_30 = arith.constant 0 : index
    %c0_31 = arith.constant 0 : index
    %52 = vector.load %arg14[%c0_30, %c0_31] : memref<1x128xf32, #tpu.memory_space<vmem>>, vector<1x128xf32>
    %53 = vector.broadcast %42 : vector<1x1xf32> to vector<1x128xf32>
    %54 = arith.mulf %53, %52 : vector<1x128xf32>
    %55 = arith.truncf %45 : vector<1x8xf32> to vector<1x8xbf16>
    %56 = arith.truncf %19 : vector<8x128xf32> to vector<8x128xbf16>
    %cst_32 = arith.constant dense<0.000000e+00> : vector<1x128xf32>
    %57 = tpu.matmul %55, %56, %cst_32 {dimension_numbers = #tpu.dot_dimension_numbers<[1], [0], [0], [1], [0, 0, 1, 1], [], []>} : vector<1x8xbf16>, vector<8x128xbf16>, vector<1x128xf32> -> vector<1x128xf32>
    %58 = arith.addf %54, %57 : vector<1x128xf32>
    %c0_33 = arith.constant 0 : index
    %c0_34 = arith.constant 0 : index
    %59 = vector.load %arg14[%c0_33, %c0_34] : memref<1x128xf32, #tpu.memory_space<vmem>>, vector<1x128xf32>
    tpu.vector_store %arg14[%c0_33, %c0_34], %58 {strides = array<i32>} : memref<1x128xf32, #tpu.memory_space<vmem>>, vector<1x128xf32>,
    %c0_35 = arith.constant 0 : index
    %c0_36 = arith.constant 0 : index
    %60 = vector.load %arg12[%c0_35, %c0_36] : memref<1x1xf32, #tpu.memory_space<vmem>>, vector<1x1xf32>
    tpu.vector_store %arg12[%c0_35, %c0_36], %40 {strides = array<i32>} : memref<1x1xf32, #tpu.memory_space<vmem>>, vector<1x1xf32>,
    %c1_i32 = arith.constant 1 : i32
    %61 = arith.cmpi eq, %arg0, %c1_i32 : i32
    %62 = arith.extui %61 : i1 to i32
    %c0_i32_37 = arith.constant 0 : i32
    %63 = arith.cmpi ne, %62, %c0_i32_37 : i32
    scf.if %63 {
      %c0_38 = arith.constant 0 : index
      %c0_39 = arith.constant 0 : index
      %64 = vector.load %arg13[%c0_38, %c0_39] : memref<1x1xf32, #tpu.memory_space<vmem>>, vector<1x1xf32>
      %65 = tpu.reciprocal %64 {approx = true} : vector<1x1xf32> -> vector<1x1xf32>
      %c0_40 = arith.constant 0 : index
      %c0_41 = arith.constant 0 : index
      %66 = vector.load %arg13[%c0_40, %c0_41] : memref<1x1xf32, #tpu.memory_space<vmem>>, vector<1x1xf32>
      %67 = arith.mulf %66, %65 : vector<1x1xf32>
      %cst_42 = arith.constant 2.000000e+00 : f32
      %68 = vector.broadcast %cst_42 : f32 to vector<1x1xf32>
      %69 = arith.subf %68, %67 : vector<1x1xf32>
      %70 = arith.mulf %65, %69 : vector<1x1xf32>
      %c0_43 = arith.constant 0 : index
      %c0_44 = arith.constant 0 : index
      %71 = vector.load %arg14[%c0_43, %c0_44] : memref<1x128xf32, #tpu.memory_space<vmem>>, vector<1x128xf32>
      %72 = vector.broadcast %70 : vector<1x1xf32> to vector<1x128xf32>
      %73 = arith.mulf %71, %72 : vector<1x128xf32>
      %74 = arith.truncf %73 : vector<1x128xf32> to vector<1x128xbf16>
      %c0_45 = arith.constant 0 : index
      %c0_46 = arith.constant 0 : index
      %75 = vector.load %arg8[%c0_45, %c0_46] : memref<128x128xbf16, #tpu.memory_space<vmem>>, vector<128x128xbf16>
      %cst_47 = arith.constant dense<0.000000e+00> : vector<1x128xf32>
      %76 = tpu.matmul %74, %75, %cst_47 {dimension_numbers = #tpu.dot_dimension_numbers<[1], [0], [0], [1], [0, 0, 1, 1], [], []>} : vector<1x128xbf16>, vector<128x128xbf16>, vector<1x128xf32> -> vector<1x128xf32>
      %c0_48 = arith.constant 0 : index
      %c0_49 = arith.constant 0 : index
      %77 = vector.load %arg9[%c0_48, %c0_49] : memref<1x128xf32, #tpu.memory_space<vmem>>, vector<1x128xf32>
      %78 = arith.addf %76, %77 : vector<1x128xf32>
      %c0_50 = arith.constant 0 : index
      %c0_51 = arith.constant 0 : index
      %79 = vector.load %arg10[%c0_50, %c0_51] : memref<1x128xf32, #tpu.memory_space<vmem>>, vector<1x128xf32>
      tpu.vector_store %arg10[%c0_50, %c0_51], %78 {strides = array<i32>} : memref<1x128xf32, #tpu.memory_space<vmem>>, vector<1x128xf32>,
      %c0_52 = arith.constant 0 : index
      %c0_53 = arith.constant 0 : index
      %80 = vector.load %arg15[%c0_52, %c0_53] : memref<2x8xf32, #tpu.memory_space<vmem>>, vector<2x8xf32>
      %c0_54 = arith.constant 0 : index
      %c0_55 = arith.constant 0 : index
      %81 = vector.load %arg12[%c0_54, %c0_55] : memref<1x1xf32, #tpu.memory_space<vmem>>, vector<1x1xf32>
      %82 = vector.broadcast %81 : vector<1x1xf32> to vector<2x8xf32>
      %83 = arith.subf %80, %82 : vector<2x8xf32>
      %84 = math.exp %83 : vector<2x8xf32>
      %85 = vector.broadcast %70 : vector<1x1xf32> to vector<2x8xf32>
      %86 = arith.mulf %84, %85 : vector<2x8xf32>
      %c0_56 = arith.constant 0 : index
      %c0_57 = arith.constant 0 : index
      %87 = vector.load %arg11[%c0_56, %c0_57] : memref<2x8xf32, #tpu.memory_space<vmem>>, vector<2x8xf32>
      tpu.vector_store %arg11[%c0_56, %c0_57], %86 {strides = array<i32>} : memref<2x8xf32, #tpu.memory_space<vmem>>, vector<2x8xf32>,
    } else {
    }
    return
  }
  func.func @transform_0(%arg0: i32) -> (i32, i32, i32) {
    %c0_i32 = arith.constant 0 : i32
    %c0_i32_0 = arith.constant 0 : i32
    %c0_i32_1 = arith.constant 0 : i32
    return %arg0, %c0_i32, %c0_i32_0 : i32, i32, i32
  }
  func.func @transform_1(%arg0: i32) -> (i32, i32) {
    %c0_i32 = arith.constant 0 : i32
    %c0_i32_0 = arith.constant 0 : i32
    %c0_i32_1 = arith.constant 0 : i32
    return %c0_i32, %c0_i32_0 : i32, i32
  }
  func.func @transform_2(%arg0: i32) -> (i32, i32) {
    %c0_i32 = arith.constant 0 : i32
    %c0_i32_0 = arith.constant 0 : i32
    %c0_i32_1 = arith.constant 0 : i32
    return %c0_i32, %c0_i32_0 : i32, i32
  }
  func.func @transform_3(%arg0: i32) -> (i32, i32) {
    %c0_i32 = arith.constant 0 : i32
    %c0_i32_0 = arith.constant 0 : i32
    %c0_i32_1 = arith.constant 0 : i32
    return %c0_i32, %c0_i32_0 : i32, i32
  }
  func.func @transform_4(%arg0: i32) -> (i32, i32) {
    %c0_i32 = arith.constant 0 : i32
    %c0_i32_0 = arith.constant 0 : i32
    %c0_i32_1 = arith.constant 0 : i32
    return %c0_i32, %c0_i32_0 : i32, i32
  }
  func.func @transform_5(%arg0: i32) -> (i32, i32) {
    %c0_i32 = arith.constant 0 : i32
    %c0_i32_0 = arith.constant 0 : i32
    %c0_i32_1 = arith.constant 0 : i32
    return %c0_i32, %c0_i32_0 : i32, i32
  }
  func.func @transform_6(%arg0: i32) -> (i32, i32) {
    %c0_i32 = arith.constant 0 : i32
    %c0_i32_0 = arith.constant 0 : i32
    %c0_i32_1 = arith.constant 0 : i32
    return %c0_i32, %c0_i32_0 : i32, i32
  }
  func.func @transform_7(%arg0: i32) -> (i32, i32) {
    %c0_i32 = arith.constant 0 : i32
    %c0_i32_0 = arith.constant 0 : i32
    %c0_i32_1 = arith.constant 0 : i32
    return %c0_i32, %c0_i32_0 : i32, i32
  }
  func.func @transform_8(%arg0: i32) -> (i32, i32) {
    %c0_i32 = arith.constant 0 : i32
    %c0_i32_0 = arith.constant 0 : i32
    %c0_i32_1 = arith.constant 0 : i32
    return %c0_i32, %c0_i32_0 : i32, i32
  }
  func.func @transform_9(%arg0: i32) -> (i32, i32) {
    %c0_i32 = arith.constant 0 : i32
    %c0_i32_0 = arith.constant 0 : i32
    %c0_i32_1 = arith.constant 0 : i32
    return %c0_i32, %c0_i32_0 : i32, i32
  }
  func.func @transform_10(%arg0: i32) -> (i32, i32) {
    %c0_i32 = arith.constant 0 : i32
    %c0_i32_0 = arith.constant 0 : i32
    %c0_i32_1 = arith.constant 0 : i32
    return %c0_i32, %c0_i32_0 : i32, i32
  }
}

</mosaic_0001>

<bundles_post_ra>
// kernel: tpu_custom_call.1
= control target key start
LH: loop header
LB: loop body
LE: loop exit
PB: predicated region body
PF: predicated region fallthrough
CT: control target
= control target key end

     0   :  { %s2215_s0 = inlined_call_operand.hbm [shape: bf16[16,4,256], index: 0, kind: input, shape index: {}]   ;;  %s2216_s1 = inlined_call_operand.vmem [shape: bf16[4,128], index: 1, kind: input, shape index: {}]   ;;  %s2217_s2 = inlined_call_operand.vmem [shape: f32[1,128], index: 2, kind: input, shape index: {}]   ;;  %s2218_s3 = inlined_call_operand.hbm [shape: bf16[128,128], index: 3, kind: input, shape index: {}]   ;;  %s2219_s4 = inlined_call_operand.vmem [shape: f32[1,128], index: 4, kind: input, shape index: {}]   ;;  %s2220_s5 = inlined_call_operand.hbm [shape: bf16[128,256], index: 5, kind: input, shape index: {}]   ;;  %s2221_s6 = inlined_call_operand.vmem [shape: bf16[1,128], index: 6, kind: input, shape index: {}]   ;;  %s2222_s7 = inlined_call_operand.hbm [shape: bf16[128,128], index: 7, kind: input, shape index: {}]   ;;  %s2223_s8 = inlined_call_operand.vmem [shape: f32[1,128], index: 8, kind: input, shape index: {}]   ;;  %s2224_s9 = inlined_call_operand.hbm [shape: f32[1,128], index: 9, kind: output, shape index: {0}]   ;;  %s2225_s10 = inlined_call_operand.hbm [shape: f32[2,8], index: 10, kind: output, shape index: {1}]  }
   0x1   :  { %2235 = sst [smem:[#allocation22_spill]] %s2218_s3 }
   0x2   :  { %2236 = sst [smem:[#allocation23_spill]] %s2224_s9 }
   0x3   :  { %2237 = sst [smem:[#allocation24_spill]] %s2225_s10 }
   0x4   :  { %16 = vsyncpa [#allocation7], 0 }
   0x5   :  { %18 = vsyncpa [#allocation7 + $0x1], 0 }
   0x6   :  { %19 = vsyncpa [#allocation10], 0 }
   0x7   :  { %20 = vsyncpa [#allocation13], 0 }
   0x8   :  { %21 = vsyncpa [#allocation8], 0 }
   0x9   :  { %22 = vsyncpa [#allocation16], 0  ;;  %s1898_s13 = smov 0   ;;  %s1900_s14 = smov 0  }
   0xa   :  { %s1902_s15 = smov 0   ;;  %s1904_s16 = smov 0  }
   0xb LB: > { %s1917_s17 = sadd.s32 4294967295, %s1823_s16   ;;  %p48_p0 = scmp.ne.s32.totalorder %s1815_s14, %s1811_s13  ;;  %s1823_s16 = sphi %s1904_s16, %s2258_s16   ;;  %s1819_s15 = sphi %s1902_s15, %s2257_s15   ;;  %s1815_s14 = sphi %s1900_s14, %s2256_s14   ;;  %s1811_s13 = sphi %s1898_s13, %s2255_s13  }
   0xc   : > { %p2226_p1 = scmp.eq.s32.totalorder %s1917_s17, 0  ;;  %p1286_p2 = scmp.ge.s32.totalorder %s1823_s16, 1 }
   0xd   : > { %p269_p3 = scmp.lt.s32.totalorder %s1823_s16, 3  ;;  %s1825_s20 = smov [#allocation9]  }
   0xe   : > { %p1926_p5 = por %p2226_p1, %p48_p0  ;;  %s287_s21 = sshll.u32 %s1825_s20, 4  ;;  %s288_s21 = int_to_ptr.vmem [resolvable:$true] %s287_s21 }
   0xf   : > { %p1930_p6 = pnand %p1286_p2, %p269_p3  ;;  %s1826_s23 = smov [#allocation11]  }
  0x10   : > { %s2238_s18 = scalar_select %p1926_p5, 1, 0 }
  0x11   : > { %s2239_s19 = scalar_select %p1930_p6, 1, 0 }
  0x12   : > { %p1475_p7 = pneg %p1930_p6  ;;  %s303_s24 = sshll.u32 %s1826_s23, 4  ;;  %s1942_s24 = int_to_ptr.vmem [resolvable:$true] %s303_s24 }
  0x13   : > { %s2241_s3 = sld [smem:[#allocation22_spill]] }
  0x14   : > { %p1938_p8 = pnand %p1475_p7, %p2226_p1 }
  0x16   : > { %p1952_p10 = pneg %p1938_p8 }
  0x19   : > { %s1607_s27 = scalar_lea.hbm %s2241_s3, 1024 }
  0x1a   : > { %p1608_p9 = scmp.ne.s32.totalorder %s2241_s3, %s1607_s27  ;;  %p1614_p13 = scmp.lt.u32.totalorder %s1607_s27, %s2241_s3 }
  0x1c   : > { %p1610_p11 = pnand %p1952_p10, %p1608_p9 }
  0x1e   : > { %p1611_p12 = pneg %p1610_p11 }
  0x20   : > { %p1616_p0 = pnand %p1614_p13, %p1611_p12 }
  0x22   : > { %1619 = shalt.err (!%p1616_p0)
}
  0x23   : > { %s1620_s13 = scalar_lea.vmem %s288_s21, 1024  ;;  %p1628_p4 = scmp.lt.s32.totalorder %s288_s21, %s288_s21 }
  0x24   : > { %p1621_p2 = scmp.ne.s32.totalorder %s288_s21, %s1620_s13  ;;  %p1629_p1 = scmp.lt.s32.totalorder %s1620_s13, %s1620_s13 }
  0x26   : > { %p1623_p3 = pnand %p1621_p2, %p1952_p10  ;;  %p1630_p5 = por %p1629_p1, %p1628_p4 }
  0x28   : > { %p1624_p7 = pneg %p1623_p3 }
  0x2a   : > { %p1631_p6 = pnand %p1630_p5, %p1624_p7 }
  0x2c   : > { %1634 = shalt.err (!%p1631_p6)
}
  0x2d   : > { %s2230_s20 = smov 64   ;;  %s2232_s23 = smov 4  }
  0x2e   : > { %1478 = dma.hbm_to_vmem [thread:$0]  (!%p1938_p8), %s2241_s3, 1024, %s288_s21, [#allocation10], %s2230_s20, %s2230_s20, %s2232_s23  }
  0x2f   : > { %s1635_s29 = scalar_lea.hbm %s2220_s5, 2048 }
  0x30   : > { %p1636_p1 = scmp.ne.s32.totalorder %s2220_s5, %s1635_s29  ;;  %p1642_p6 = scmp.lt.u32.totalorder %s1635_s29, %s2220_s5 }
  0x32   : > { %p1638_p4 = pnand %p1636_p1, %p1952_p10 }
  0x34   : > { %p1639_p5 = pneg %p1638_p4 }
  0x36   : > { %p1644_p9 = pnand %p1642_p6, %p1639_p5 }
  0x38   : > { %1647 = shalt.err (!%p1644_p9)
}
  0x39   : > { %s1648_s21 = scalar_lea.vmem %s1942_s24, 2048  ;;  %p1656_p0 = scmp.lt.s32.totalorder %s1942_s24, %s1942_s24 }
  0x3a   : > { %p1649_p11 = scmp.ne.s32.totalorder %s1942_s24, %s1648_s21  ;;  %p1657_p2 = scmp.lt.s32.totalorder %s1648_s21, %s1648_s21 }
  0x3c   : > { %p1651_p12 = pnand %p1649_p11, %p1952_p10  ;;  %p1658_p3 = por %p1657_p2, %p1656_p0 }
  0x3e   : > { %p1652_p13 = pneg %p1651_p12 }
  0x40   : > { %p1659_p7 = pnand %p1658_p3, %p1652_p13 }
  0x42   : > { %1662 = shalt.err (!%p1659_p7)
}
  0x43   : > { %s1829_s25 = smov 128   ;;  %s1830_s10 = smov 8  }
  0x44   : > { %1481 = dma.hbm_to_vmem [thread:$0]  (!%p1938_p8), %s2220_s5, 2048, %s1942_s24, [#allocation10], %s1829_s25, %s1829_s25, %s1830_s10  }
  0x45   : > { %s1831_s28 = smov [#allocation12]   ;;  %s1995_s11 = sadd.s32 1, %s1823_s16  }
  0x46   : > { %s319_s29 = sshll.u32 %s1831_s28, 4  ;;  %s1663_s21 = scalar_lea.hbm %s2222_s7, 1024  ;;  %s320_s29 = int_to_ptr.vmem [resolvable:$true] %s319_s29 }
  0x47   : > { %p1664_p1 = scmp.ne.s32.totalorder %s2222_s7, %s1663_s21  ;;  %p1670_p6 = scmp.lt.u32.totalorder %s1663_s21, %s2222_s7 }
  0x49   : > { %p1666_p4 = pnand %p1664_p1, %p1952_p10 }
  0x4b   : > { %p1667_p5 = pneg %p1666_p4 }
  0x4d   : > { %p1672_p9 = pnand %p1670_p6, %p1667_p5 }
  0x4f   : > { %1675 = shalt.err (!%p1672_p9)
}
  0x50   : > { %s1676_s24 = scalar_lea.vmem %s320_s29, 1024  ;;  %p1684_p0 = scmp.lt.s32.totalorder %s320_s29, %s320_s29 }
  0x51   : > { %p1677_p11 = scmp.ne.s32.totalorder %s320_s29, %s1676_s24  ;;  %p1685_p2 = scmp.lt.s32.totalorder %s1676_s24, %s1676_s24 }
  0x53   : > { %p1679_p12 = pnand %p1677_p11, %p1952_p10  ;;  %p1686_p3 = por %p1685_p2, %p1684_p0 }
  0x55   : > { %p1680_p13 = pneg %p1679_p12 }
  0x57   : > { %p1687_p7 = pnand %p1686_p3, %p1680_p13 }
  0x59   : > { %1690 = shalt.err (!%p1687_p7)
}
  0x5a   : > { %s2243_s20 = smov 4   ;;  %s2244_s23 = smov 64  }
  0x5b   : > { %1484 = dma.hbm_to_vmem [thread:$0]  (!%p1938_p8), %s2222_s7, 1024, %s320_s29, [#allocation13], %s2244_s23, %s2244_s23, %s2243_s20  }
  0x5c   : > { %s32_s30 = ssub.s32 %s1823_s16, %s1995_s11  ;;  %s35_s25 = sadd.s32 1, %s1819_s15 }
  0x5d   : > { %p33_p10 = scmp.eq.s32.totalorder %s32_s30, 0  ;;  %p42_p1 = scmp.ne.s32.totalorder %s1819_s15, %s1815_s14 }
  0x5e   : > { %p43_p4 = scmp.eq.s32.totalorder %s1823_s16, 0  ;;  %p1492_p5 = scmp.lt.s32.totalorder %s1823_s16, 2 }
  0x5f   : > { %s2026_s22 = scalar_select %p33_p10, %s1819_s15, %s35_s25  }
  0x60   : > { %p44_p6 = por %p43_p4, %p42_p1  ;;  %s336_s10 = sand.u32 1, %s1819_s15  }
  0x61   : > { %s1291_s26 = sshll.u32 %s336_s10, 5  ;;  %s1348_s27 = sshll.u32 %s1823_s16, 9 }
  0x62   : > { %s2033_s13 = scalar_lea.hbm %s2215_s0, %s1348_s27  ;;  %s340_s29 = scalar_lea.vmem [#allocation6], %s1291_s26 }
  0x63   : > { %s348_s21 = sshll.u32 %s340_s29, 4  ;;  %p2037_p8 = pnand %p1492_p5, %p44_p6  ;;  %s2035_s21 = int_to_ptr.vmem [resolvable:$true] %s348_s21 }
  0x64   : > { %s2041_s3 = scalar_lea.sflag [#allocation7], %s336_s10  ;;  %s1691_s9 = scalar_lea.hbm %s2033_s13, 512 }
  0x65   : > { %p1692_p9 = scmp.ne.s32.totalorder %s2033_s13, %s1691_s9  ;;  %p1693_p11 = pneg %p2037_p8 }
  0x66   : > { %s1696_s26 = scalar_lea.hbm %s2215_s0, 1024  ;;  %p1697_p0 = scmp.lt.u32.totalorder %s2033_s13, %s2215_s0 }
  0x67   : > { %p1694_p12 = pnand %p1693_p11, %p1692_p9  ;;  %p1698_p2 = scmp.lt.u32.totalorder %s1696_s26, %s1691_s9 }
  0x68   : > { %p1700_p7 = scmp.lt.u32.totalorder %s1691_s9, %s2033_s13 }
  0x69   : > { %p1695_p13 = pneg %p1694_p12  ;;  %p1699_p3 = por %p1698_p2, %p1697_p0 }
  0x6b   : > { %p1701_p10 = por %p1700_p7, %p1699_p3 }
  0x6d   : > { %p1702_p1 = pnand %p1701_p10, %p1695_p13 }
  0x6f   : > { %1705 = shalt.err (!%p1702_p1)
}
  0x70   : > { %s1706_s10 = scalar_lea.vmem %s2035_s21, 512  ;;  %s1832_s12 = smov [#allocation6]  }
  0x71   : > { %p1707_p4 = scmp.ne.s32.totalorder %s2035_s21, %s1706_s10  ;;  %s1711_s29 = sshll.u32 %s1832_s12, 4  ;;  %s1712_s29 = int_to_ptr.vmem [resolvable:$false] %s1711_s29 }
  0x72   : > { %s1713_s30 = scalar_lea.vmem %s1712_s29, 1024  ;;  %p1714_p9 = scmp.lt.s32.totalorder %s2035_s21, %s1712_s29 }
  0x73   : > { %p1709_p5 = pnand %p1707_p4, %p1693_p11  ;;  %p1715_p12 = scmp.lt.s32.totalorder %s1713_s30, %s1706_s10 }
  0x75   : > { %p1710_p6 = pneg %p1709_p5  ;;  %p1716_p0 = por %p1715_p12, %p1714_p9 }
  0x77   : > { %p1717_p2 = pnand %p1716_p0, %p1710_p6 }
  0x79   : > { %1720 = shalt.err (!%p1717_p2)
}
  0x7a   : > { %1488 = dma.hbm_to_vmem [thread:$0]  (!%p2037_p8), %s2033_s13, 512, %s2035_s21, %s2041_s3, %s2244_s23, %s2244_s23, %s2243_s20  }
  0x7b   : > { %p2246_p11 = scmp.ne.s32.totalorder %s2239_s19, 0 }
  0x7c   : > { %s362_s9 = sand.u32 (!%p2246_p11), 1, %s1815_s14   ;;  %p2247_p13 = scmp.ne.s32.totalorder (!%p2246_p11), %s2238_s18, 0 }
  0x7d   : > { %360 = sbr.rel (%p2246_p11) target bundleno = 2085 (0x825), region = 56  ;;  %s1296_s25 = sshll.u32 (!%p2246_p11), %s362_s9, 5 }
  0x7e   : > { %s363_s26 = scalar_lea.sflag (!%p2246_p11), [#allocation7], %s362_s9  ;;  %s366_s27 = scalar_lea.vmem (!%p2246_p11), [#allocation6], %s1296_s25 }
  0x84   : > { %1790 = dma.done.wait (%p2247_p13), %s363_s26, 512  }
  0x85   : > { %1792 = vsyncadd (%p2247_p13), %s363_s26, 4294966784  ;;  %p2248_p3 = scmp.eq.s32.totalorder %s1917_s17, 0 }
  0x87   : > { %1794 = dma.done.wait (%p2248_p3), [#allocation10], 3072   ;;  %p2249_p7 = pmov %p2248_p3 }
  0x88   : > { %p2250_p8 = pmov %p2248_p3 }
  0x89   : > { %1796 = vsyncadd (%p2249_p7), [#allocation10], 4294964224 }
  0x8a   : > { %1798 = dma.done.wait (%p2250_p8), [#allocation13], 1024   ;;  %p2251_p10 = pmov %p2248_p3 }
  0x8b   : > { %p2252_p1 = scmp.ne.s32.totalorder %s1917_s17, 0 }
  0x8c   : > { %1800 = vsyncadd (%p2251_p10), [#allocation13], 4294966272  ;;  %vm416_vm0 = vcmask (!%p2252_p1), 0   ;;  %v1833_v0 = vmov (!%p2252_p1), -inf   ;;  %v1834_v1 = vmov (!%p2252_p1), 0.0  }
  0x8d   : > { %415 = sbr.rel (%p2252_p1) target bundleno = 148 (0x94), region = 76  ;;  %417 = vst.msk [vmem:[#allocation2] sm:$0x1] (!%p2252_p1), %vm416_vm0, %v1833_v0  ;;  %418 = vst.msk [vmem:[#allocation3] sm:$0x1] (!%p2252_p1), %vm416_vm0, %v1834_v1 }
  0x8e   : > { %419 = vst [vmem:[#allocation4] sm:$0x1] (!%p2252_p1), %v1834_v1 }
  0x94 PF: > { %v1353_v2 = vld [vmem:[%s366_s27] sm:$0xff]   ;;  %vm460_vm1 = vcmask 1043456   ;;  %v1368_v3 = vld [vmem:[%s366_s27 + $0x8] sm:$0xff]   ;;  %v1369_v4 = vld [vmem:[%s366_s27 + $0x10] sm:$0xff]   ;;  %vm586_vm2 = vcmask 1041408   ;;  %v1835_v47 = vmov 0.0   ;;  %v533_v56 = vlaneseq }
  0x95   : > { %v1354_v5 = vunpack.c.l.bf16 %v1353_v2  ;;  %v1358_v6 = vunpack.c.l.bf16 %v1368_v3  ;;  %v1355_v7 = vunpack.c.h.bf16 %v1353_v2  ;;  %v1359_v8 = vunpack.c.h.bf16 %v1368_v3  ;;  %v1370_v9 = vld [vmem:[%s366_s27 + $0x18] sm:$0xff]   ;;  %1395 = vmatprep.subr.bf16.mxu0 %v1835_v47  ;;  %1401 = vmatprep.subr.bf16.mxu1 %v1835_v47  ;;  %v1551_v49 = vld [vmem:[#allocation9] sm:$0xff]   ;;  %v1552_v50 = vld [vmem:[#allocation9 + $0x8] sm:$0xff]   ;;  %s1349_s28 = scalar_lea.vmem [#allocation5], %s1823_s16  ;;  %p1331_p4 = scmp.ne.s32.totalorder %s1917_s17, 1 }
  0x96   : > { %v1362_v10 = vunpack.c.l.bf16 %v1369_v4  ;;  %v1363_v11 = vunpack.c.h.bf16 %v1369_v4  ;;  %v1366_v12 = vunpack.c.l.bf16 %v1370_v9  ;;  %v1367_v20 = vunpack.c.h.bf16 %v1370_v9  ;;  %v509_v46 = vld [vmem:[%s2216_s1] sm:$0x3]  ;;  %1402 = vmatpush3.bf16.msra.mxu1 %v1551_v49  ;;  %v1553_v51 = vld [vmem:[#allocation9 + $0x10] sm:$0xff]   ;;  %v1555_v53 = vld [vmem:[#allocation9 + $0x20] sm:$0xff]  }
  0x97   : > { %v444_v13 = vcombine.high %v1354_v5, %v1354_v5  ;;  %v461_v14 = vsel %vm460_vm1, %v1354_v5, 0.0  ;;  %v446_v15 = vcombine.high %v1358_v6, %v1358_v6  ;;  %v471_v16 = vsel %vm460_vm1, %v1358_v6, 0.0  ;;  %1403 = vmatprep.subr.bf16.mxu1 %v1835_v47  ;;  %v1554_v52 = vld [vmem:[#allocation9 + $0x18] sm:$0xff]   ;;  %v1556_v54 = vld [vmem:[#allocation9 + $0x28] sm:$0xff]   ;;  %v1557_v55 = vld [vmem:[#allocation9 + $0x30] sm:$0xff]  }
  0x98   : > { %v445_v17 = vcombine.high %v1355_v7, %v1355_v7  ;;  %v466_v18 = vsel %vm460_vm1, %v1355_v7, 0.0  ;;  %v447_v19 = vcombine.high %v1359_v8, %v1359_v8  ;;  %v476_v23 = vsel %vm460_vm1, %v1359_v8, 0.0  ;;  %v1574_v49 = vld [vmem:[#allocation11 + $0x50] ss:$8 sps:$4 sm:$0xff]  }
  0x99   : > { %v462_v21 = vsel %vm460_vm1, %v444_v13, 0.0  ;;  %v472_v22 = vsel %vm460_vm1, %v446_v15, 0.0  ;;  %v448_v24 = vcombine.high %v1362_v10, %v1362_v10  ;;  %v449_v29 = vcombine.high %v1363_v11, %v1363_v11 }
  0x9a   : > { %v463_v25 = vadd.f32 %v462_v21, %v461_v14  ;;  %v473_v26 = vadd.f32 %v472_v22, %v471_v16  ;;  %v467_v27 = vsel %vm460_vm1, %v445_v17, 0.0  ;;  %v477_v28 = vsel %vm460_vm1, %v447_v19, 0.0  ;;  %1404 = vmatpush3.bf16.msra.mxu1 %v1552_v50  ;;  %v1579_v50 = vld [vmem:[#allocation11 + $0x64] ss:$8 sps:$4 sm:$0xff]  }
  0x9b   : > { %v468_v30 = vadd.f32 %v467_v27, %v466_v18  ;;  %v478_v31 = vadd.f32 %v477_v28, %v476_v23  ;;  %v481_v32 = vsel %vm460_vm1, %v1362_v10, 0.0  ;;  %v482_v33 = vsel %vm460_vm1, %v448_v24, 0.0  ;;  %1405 = vmatprep.subr.bf16.mxu1 %v1835_v47 }
  0x9c   : > { %464 = vadd.xlane.f32.xlu0 %v463_v25  ;;  %474 = vadd.xlane.f32.xlu1 %v473_v26  ;;  %v486_v34 = vsel %vm460_vm1, %v1363_v11, 0.0  ;;  %v487_v35 = vsel %vm460_vm1, %v449_v29, 0.0  ;;  %v450_v36 = vcombine.high %v1366_v12, %v1366_v12  ;;  %v451_v37 = vcombine.high %v1367_v20, %v1367_v20 }
  0x9d   : > { %v483_v38 = vadd.f32 %v482_v33, %v481_v32  ;;  %v488_v39 = vadd.f32 %v487_v35, %v486_v34  ;;  %v491_v40 = vsel %vm460_vm1, %v1366_v12, 0.0  ;;  %v496_v42 = vsel %vm460_vm1, %v1367_v20, 0.0 }
  0x9e   : > { %v492_v41 = vsel %vm460_vm1, %v450_v36, 0.0  ;;  %v497_v43 = vsel %vm460_vm1, %v451_v37, 0.0  ;;  %v588_v48 = vsel %vm586_vm2, %v509_v46, 0  ;;  %vm1836_vm3 = vmmov 0   ;;  %1406 = vmatpush3.bf16.msra.mxu1 %v1553_v51  ;;  %v1558_v36 = vld [vmem:[#allocation9 + $0x38] sm:$0xff]  }
  0x9f   : > { %v493_v44 = vadd.f32 %v492_v41, %v491_v40  ;;  %v498_v45 = vadd.f32 %v497_v43, %v496_v42  ;;  %1396 = vmatpush3.bf16.msra.mxu0 %v588_v48  ;;  %1397 = vmatprep.mubr.msk.bf16.mxu0 %vm1836_vm3, %v1835_v47  ;;  %v534_v57 = vand.u32 127, %v533_v56  ;;  %v2121_v58 = vshrl.u32 %v533_v56, 7  ;;  %v1559_v37 = vld [vmem:[#allocation11] ss:$8 sps:$4 sm:$0xff]   ;;  %v1562_v40 = vld [vmem:[#allocation11 + $0x10] ss:$8 sps:$4 sm:$0xff]  }
  0xa0   : > { %469 = vadd.xlane.f32.xlu0 %v468_v30  ;;  %479 = vadd.xlane.f32.xlu1 %v478_v31  ;;  %vm567_vm4 = vcmask 1041409   ;;  %vm569_vm5 = vcmask 1042434   ;;  %vm571_vm6 = vcmask 1043459   ;;  %vm573_vm7 = vcmask 1044484   ;;  %v1567_v41 = vld [vmem:[#allocation11 + $0x24] ss:$8 sps:$4 sm:$0xff]  }
  0xa1   : > { %1417 = vmatprep.mubr.msk.bf16.mxu1 %vm1836_vm3, %v1835_v47  ;;  %1407 = vmatprep.subr.bf16.mxu1 %v1835_v47  ;;  %v537_v63 = vsub.s32 %v534_v57, %v2121_v58  ;;  %vm575_vm8 = vcmask 1045509   ;;  %vm577_vm9 = vcmask 1046534   ;;  %vm579_vm10 = vcmask 1047559   ;;  %v1565_v42 = vld [vmem:[#allocation11 + $0x20] ss:$8 sps:$4 sm:$0xff]  }
  0xa2   : > { %1408 = vmatpush3.bf16.msra.mxu1 %v1554_v52  ;;  %vm582_vm11 = vcmask 31744   ;;  %v1570_v43 = vld [vmem:[#allocation11 + $0x34] ss:$8 sps:$4 sm:$0xff]   ;;  %v1571_v46 = vld [vmem:[#allocation11 + $0x40] ss:$8 sps:$4 sm:$0xff]   ;;  %vm932_vm12 = vcmask 57344  }
  0xa3   : > { %1409 = vmatprep.subr.bf16.mxu1 %v1835_v47  ;;  %v1576_v48 = vld [vmem:[#allocation11 + $0x54] ss:$8 sps:$4 sm:$0xff]   ;;  %v1577_v51 = vld [vmem:[#allocation11 + $0x60] ss:$8 sps:$4 sm:$0xff]   ;;  %v1301_v52 = vld [vmem:[%s2217_s2] ss:$0 sm:$0xff] }
  0xa4   : > { %484 = vadd.xlane.f32.xlu0 %v483_v38  ;;  %489 = vadd.xlane.f32.xlu1 %v488_v39  ;;  %v1561_v38 = vld [vmem:[#allocation11 + $0x4] ss:$8 sps:$4 sm:$0xff]   ;;  %v1564_v39 = vld [vmem:[#allocation11 + $0x14] ss:$8 sps:$4 sm:$0xff]   ;;  %vm960_vm13 = vcmask 0   ;;  %vm974_vm14 = vcmask 64512  }
  0xa5   : > { %840 = vmatprep.subr.bf16.mxu0 %v1561_v38  ;;  %v954_v38 = vld [vmem:[#allocation3] sm:$0x1]  ;;  %vm1840_vm15 = vmmov (!%p1331_p4), 0   ;;  %vm1174_vm0 = vcmask (!%p1331_p4), 58368  }
  0xa6   : > { %1410 = vmatpush3.bf16.msra.mxu1 %v1555_v53 }
  0xa7   : > { %1411 = vmatprep.subr.bf16.mxu1 %v1835_v47 }
  0xa8   : > { %494 = vadd.xlane.f32.xlu0 %v493_v44  ;;  %499 = vadd.xlane.f32.xlu1 %v498_v45  ;;  %v1568_v44 = vld [vmem:[#allocation11 + $0x30] ss:$8 sps:$4 sm:$0xff]   ;;  %v1573_v45 = vld [vmem:[#allocation11 + $0x44] ss:$8 sps:$4 sm:$0xff]  }
  0xaa   : > { %1412 = vmatpush3.bf16.msra.mxu1 %v1556_v54 }
  0xab   : > { %1413 = vmatprep.subr.bf16.mxu1 %v1835_v47 }
  0xae   : > { %1414 = vmatpush3.bf16.msra.mxu1 %v1557_v55 }
  0xaf   : > { %1415 = vmatprep.subr.bf16.mxu1 %v1835_v47 }
  0xb2   : > { %1416 = vmatpush3.bf16.msra.mxu1 %v1558_v36 }
  0xb3   : > { %1421 = vmatprep.subr.bf16.mxu1 %v1835_v47 }
 0x129   : > { %v465_v59 = vpop.xlane.xlu0 %464  ;;  %v475_v60 = vpop.xlane.xlu1 %474 }
 0x12a   : > { %v501_v61 = vpack.c.bf16 %v465_v59, %v465_v59  ;;  %v503_v62 = vpack.c.bf16 %v475_v60, %v475_v60  ;;  %v1582_v60 = vld [vmem:[#allocation11 + $0x74] ss:$8 sps:$4 sm:$0xff]  }
 0x12c   : > { %v525_v0 = vunpack.c.l.b16 %v501_v61  ;;  %v527_v5 = vunpack.c.l.b16 %v503_v62  ;;  %v1580_v61 = vld [vmem:[#allocation11 + $0x70] ss:$8 sps:$4 sm:$0xff]   ;;  %v1837_v62 = vmov 0  }
 0x12d   : > { %v470_v1 = vpop.xlane.xlu0 %469  ;;  %v480_v2 = vpop.xlane.xlu1 %479  ;;  %1549 = vset.pattern.permute.xlu1 %v1837_v62  ;;  %1550 = vset.pattern.permute.xlu0 %v1837_v62 }
 0x12e   : > { %v502_v3 = vpack.c.bf16 %v470_v1, %v470_v1  ;;  %v504_v4 = vpack.c.bf16 %v480_v2, %v480_v2  ;;  %v538_v8 = vrot.slane %v525_v0, %v537_v63  ;;  %v546_v15 = vrot.slane %v527_v5, %v537_v63 }
 0x130   : > { %v526_v6 = vunpack.c.l.b16 %v502_v3  ;;  %v528_v7 = vunpack.c.l.b16 %v504_v4 }
 0x131   : > { %v485_v9 = vpop.xlane.xlu0 %484  ;;  %v490_v10 = vpop.xlane.xlu1 %489 }
 0x132   : > { %v542_v11 = vrot.slane %v526_v6, %v537_v63  ;;  %v550_v12 = vrot.slane %v528_v7, %v537_v63  ;;  %v505_v13 = vpack.c.bf16 %v485_v9, %v485_v9  ;;  %v506_v14 = vpack.c.bf16 %v490_v10, %v490_v10 }
 0x134   : > { %v568_v16 = vsel %vm567_vm4, %v542_v11, %v538_v8  ;;  %v529_v17 = vunpack.c.l.b16 %v505_v13  ;;  %v530_v18 = vunpack.c.l.b16 %v506_v14 }
 0x135   : > { %v570_v19 = vsel %vm569_vm5, %v546_v15, %v568_v16  ;;  %v495_v20 = vpop.xlane.xlu0 %494  ;;  %v500_v21 = vpop.xlane.xlu1 %499 }
 0x136   : > { %v572_v22 = vsel %vm571_vm6, %v550_v12, %v570_v19  ;;  %v554_v23 = vrot.slane %v529_v17, %v537_v63  ;;  %v507_v24 = vpack.c.bf16 %v495_v20, %v495_v20  ;;  %v558_v25 = vrot.slane %v530_v18, %v537_v63 }
 0x137   : > { %v508_v26 = vpack.c.bf16 %v500_v21, %v500_v21 }
 0x138   : > { %v574_v27 = vsel %vm573_vm7, %v554_v23, %v572_v22  ;;  %v531_v28 = vunpack.c.l.b16 %v507_v24  ;;  %v934_v24 = vld [vmem:[#allocation2] sm:$0x1] }
 0x139   : > { %v532_v29 = vunpack.c.l.b16 %v508_v26  ;;  %v576_v31 = vsel %vm575_vm8, %v558_v25, %v574_v27 }
 0x13a   : > { %v562_v30 = vrot.slane %v531_v28, %v537_v63  ;;  %v2145_v28 = vsub.s32 0, %v2121_v58 }
 0x13b   : > { %v566_v32 = vrot.slane %v532_v29, %v537_v63  ;;  %v1303_v63 = vld [vmem:[%s2219_s4] ss:$0 sm:$0xff] }
 0x13c   : > { %v578_v33 = vsel %vm577_vm9, %v562_v30, %v576_v31 }
 0x13d   : > { %v580_v34 = vsel %vm579_vm10, %v566_v32, %v578_v33 }
 0x13e   : > { %v581_v35 = vpack.c.b16 %v580_v34, %v580_v34 }
 0x140   : > { %1398 = vmatmul.mubr.msk.bf16.vlgmr.msra.gmra.mrb[0].mxu0 %vm582_vm11, %v581_v35 }
 0x141   : > { %841 = vmatpush1.bf16.msra.mxu0 %v1559_v37  ;;  %872 = vmatprep.mubr.bf16.mxu0 %v1837_v62  ;;  %v1599_v62 = vld [vmem:[#allocation12 + $0x20] sm:$0xff] (!%p1331_p4)  }
 0x142   : > { %842 = vmatprep.subr.bf16.mxu0 %v1564_v39 }
 0x145   : > { %843 = vmatpush1.bf16.msra.mxu0 %v1562_v40 }
 0x146   : > { %844 = vmatprep.subr.bf16.mxu0 %v1567_v41 }
 0x149   : > { %845 = vmatpush1.bf16.msra.mxu0 %v1565_v42 }
 0x14a   : > { %846 = vmatprep.subr.bf16.mxu0 %v1570_v43  ;;  %v962_v43 = vld [vmem:[#allocation4] sm:$0x1] }
 0x14d   : > { %847 = vmatpush1.bf16.msra.mxu0 %v1568_v44 }
 0x14e   : > { %848 = vmatprep.subr.bf16.mxu0 %v1573_v45 }
 0x151   : > { %849 = vmatpush1.bf16.msra.mxu0 %v1571_v46 }
 0x152   : > { %850 = vmatprep.subr.bf16.mxu0 %v1576_v48 }
 0x155   : > { %851 = vmatpush1.bf16.msra.mxu0 %v1574_v49 }
 0x156   : > { %852 = vmatprep.subr.bf16.mxu0 %v1579_v50 }
 0x159   : > { %853 = vmatpush1.bf16.msra.mxu0 %v1577_v51 }
 0x15a   : > { %854 = vmatprep.subr.bf16.mxu0 %v1582_v60 }
 0x15d   : > { %855 = vmatpush1.bf16.msra.mxu0 %v1580_v61 }
 0x15e   : > { %1427 = vmatprep.subr.bf16.mxu0 %v1835_v47 }
 0x213   : > { %v624_v53 = vpop.f32.mrb[0].mxu0 }
 0x214   : > { %v625_v54 = vadd.f32 %v1301_v52, %v624_v53  ;;  %v1399_v55 = vpop.f32.mrb[1].mxu0  ;;  %v1838_v52 = vmov (!%p1331_p4), 0   ;;  %v1595_v53 = vld [vmem:[#allocation12] sm:$0xff] (!%p1331_p4)  }
 0x215   : > { %v627_v56 = vpop.f32.mrb[2].mxu0  ;;  %v1596_v55 = vld [vmem:[#allocation12 + $0x8] sm:$0xff] (!%p1331_p4)  }
 0x216   : > { %v630_v57 = vpack.c.bf16 %v625_v54, %v625_v54  ;;  %v1400_v59 = vpop.f32.mrb[3].mxu0  ;;  %v1839_v54 = vmov (!%p1331_p4), 0.0   ;;  %v1597_v56 = vld [vmem:[#allocation12 + $0x10] sm:$0xff] (!%p1331_p4)  }
 0x217   : > { %v1598_v59 = vld [vmem:[#allocation12 + $0x18] sm:$0xff] (!%p1331_p4)  }
 0x218   : > { %1418 = vmatmul.mubr.bf16.vlgmr.msra.gmra.mrb[0].mxu1 %v630_v57 }
 0x219   : > { %1423 = vmatprep.mubr.msk.bf16.mxu1 %vm1836_vm3, %v1835_v47 }
 0x2eb   : > { %v736_v0 = vpop.f32.mrb[0].mxu1 }
 0x2ec   : > { %v737_v1 = vadd.f32 %v1303_v63, %v736_v0  ;;  %v1419_v2 = vpop.f32.mrb[1].mxu1 }
 0x2ed   : > { %v739_v3 = vpop.f32.mrb[2].mxu1  ;;  %v1600_v2 = vld [vmem:[#allocation12 + $0x28] sm:$0xff] (!%p1331_p4)  }
 0x2ee   : > { %v742_v4 = vmax.f32 %v737_v1, 0.0  ;;  %v1420_v5 = vpop.f32.mrb[3].mxu1  ;;  %v1601_v3 = vld [vmem:[#allocation12 + $0x30] sm:$0xff] (!%p1331_p4)  }
 0x2f0   : > { %v743_v6 = vpack.c.bf16 %v742_v4, %v742_v4  ;;  %v1602_v4 = vld [vmem:[#allocation12 + $0x38] sm:$0xff] (!%p1331_p4)  }
 0x2f2   : > { %873 = vmatmul.mubr.bf16.vlgmr.msra.gmra.mrb[4].mxu0 %v743_v6  ;;  %v979_v7 = vsel %vm460_vm1, %v743_v6, 0 }
 0x2f3   : > { %1428 = vmatpush3.bf16.msra.mxu0 %v979_v7  ;;  %1429 = vmatprep.mubr.msk.bf16.mxu0 %vm1836_vm3, %v1835_v47  ;;  %v889_v47 = vld [vmem:[%s2221_s6] sm:$0x1] }
 0x2f4   : > { %1433 = vmatprep.subr.bf16.mxu0 (!%p1331_p4), %v1839_v54 }
 0x3c5   : > { %v874_v8 = vpop.f32.mrb[4].mxu0 }
 0x3c6   : > { %v876_v9 = vpop.f32.mrb[5].mxu0 }
 0x3c7   : > { %v1328_v10 = vmul.f32 -1.442695, %v876_v9  ;;  %v878_v11 = vpop.f32.mrb[6].mxu0 }
 0x3c8   : > { %v879_v12 = vpop.f32.mrb[7].mxu0 }
 0x3c9   : > { %1583 = vpow2.f32 %v1328_v10 }
 0x3ca   : > { %1585 = vtanh.f32 %v874_v8 }
 0x3d3   : > { %v1584_v13 = vpop.eup %1583 }
 0x3d4   : > { %v885_v14 = vadd.f32 1.0, %v1584_v13  ;;  %v1586_v15 = vpop.eup %1585 }
 0x3d6   : > { %1587 = vrcp.f32 %v885_v14 }
 0x3e0   : > { %v1588_v16 = vpop.eup %1587 }
 0x3e1   : > { %v888_v17 = vmul.f32 %v1588_v16, %v1586_v15 }
 0x3e3   : > { %v890_v18 = vpack.c.bf16 %v888_v17, %v888_v17  ;;  %v1061_v17 = vld [vmem:[%s2223_s8] sm:$0x1] (!%p1331_p4) }
 0x3e5   : > { %1422 = vmatpush3.bf16.xpose.msra.mxu1 %v890_v18 }
 0x3ec   : > { %1424 = vmatmul.mubr.bf16.vlgmr.msra.gmra.mrb[4].mxu1 %v889_v47 }
 0x4bf   : > { %v925_v19 = vpop.f32.mrb[4].mxu1 }
 0x4c0   : > { %v1425_v20 = vpop.f32.mrb[5].mxu1  ;;  %v935_v21 = vsel %vm932_vm12, %v925_v19, -inf  ;;  %1351 = vst.msk [vmem:[%s1349_s28 - $0x1] sm:$0x1] %vm932_vm12, %v925_v19 }
 0x4c1   : > { %936 = vmax.xlane.f32.xlu0 %v935_v21  ;;  %v928_v22 = vpop.f32.mrb[6].mxu1 }
 0x4c2   : > { %v1426_v23 = vpop.f32.mrb[7].mxu1 }
 0x4c7   : > { %v1151_v8 = vld [vmem:[#allocation5] sm:$0x3] (!%p1331_p4) }
 0x54e   : > { %v937_v25 = vpop.xlane.xlu0 %936 }
 0x54f   : > { %v938_v26 = vmax.f32 %v934_v24, %v937_v25 }
 0x551   : > { %v939_v27 = vsub.f32 %v934_v24, %v938_v26  ;;  %1023 = vst.msk [vmem:[#allocation2] sm:$0x1] %vm960_vm13, %v938_v26  ;;  %944 = vperm.xlu1 %1549, %v938_v26  }
 0x553   : > { %v940_v36 = vmul.f32 1.442695, %v939_v27 }
 0x555   : > { %1594 = vset.pattern.permute.xlu1 (!%p1331_p4), %v1838_v52 }
 0x558   : > { %v1340_v1 = vld [vmem:[#allocation2] ss:$0 sm:$0xff] (!%p1331_p4) }
 0x5d0   : > { %v945_v29 = vpop.permute.xlu1 %944 }
 0x5d1   : > { %v950_v30 = vrot.slane %v945_v29, %v2145_v28 }
 0x5d3   : > { %v951_v31 = vsub.f32 %v925_v19, %v950_v30 }
 0x5d5   : > { %v952_v32 = vmul.f32 1.442695, %v951_v31 }
 0x5d7   : > { %1589 = vpow2.f32 %v952_v32 }
 0x5d8   : > { %1591 = vpow2.f32 %v940_v36 }
 0x5e1   : > { %v1590_v33 = vpop.eup %1589 }
 0x5e2   : > { %v956_v34 = vsel %vm932_vm12, %v1590_v33, 0.0  ;;  %v973_v35 = vpack.c.bf16 %v1590_v33, %v1590_v33  ;;  %v1592_v37 = vpop.eup %1591 }
 0x5e3   : > { %957 = vadd.xlane.f32.xlu0 %v956_v34  ;;  %v955_v58 = vmul.f32 %v1592_v37, %v954_v38 }
 0x5e4   : > { %1430 = vmatmul.mubr.msk.bf16.vlgmr.msra.gmra.mrb[8].mxu0 %vm974_vm14, %v973_v35 }
 0x5e5   : > { %1434 = vmatpush3.bf16.msra.mxu0 (!%p1331_p4), %v1595_v53  ;;  %1449 = vmatprep.mubr.msk.bf16.mxu0 (!%p1331_p4), %vm1840_vm15, %v1839_v54 }
 0x5e6   : > { %1435 = vmatprep.subr.bf16.mxu0 (!%p1331_p4), %v1839_v54 }
 0x5e9   : > { %1436 = vmatpush3.bf16.msra.mxu0 (!%p1331_p4), %v1596_v55 }
 0x5ea   : > { %1437 = vmatprep.subr.bf16.mxu0 (!%p1331_p4), %v1839_v54 }
 0x5ed   : > { %1438 = vmatpush3.bf16.msra.mxu0 (!%p1331_p4), %v1597_v56 }
 0x5ee   : > { %1439 = vmatprep.subr.bf16.mxu0 (!%p1331_p4), %v1839_v54 }
 0x5f1   : > { %1440 = vmatpush3.bf16.msra.mxu0 (!%p1331_p4), %v1598_v59 }
 0x5f2   : > { %1441 = vmatprep.subr.bf16.mxu0 (!%p1331_p4), %v1839_v54 }
 0x5f5   : > { %1442 = vmatpush3.bf16.msra.mxu0 (!%p1331_p4), %v1599_v62 }
 0x5f6   : > { %1443 = vmatprep.subr.bf16.mxu0 (!%p1331_p4), %v1839_v54 }
 0x5f9   : > { %965 = vperm.xlu0 %1550, %v1592_v37   ;;  %1444 = vmatpush3.bf16.msra.mxu0 (!%p1331_p4), %v1600_v2 }
 0x5fa   : > { %1445 = vmatprep.subr.bf16.mxu0 (!%p1331_p4), %v1839_v54 }
 0x5fd   : > { %1593 = vset.pattern.permute.xlu0 (!%p1331_p4), %v1838_v52  ;;  %1446 = vmatpush3.bf16.msra.mxu0 (!%p1331_p4), %v1601_v3 }
 0x5fe   : > { %1447 = vmatprep.subr.bf16.mxu0 (!%p1331_p4), %v1839_v54 }
 0x601   : > { %1448 = vmatpush3.bf16.msra.mxu0 (!%p1331_p4), %v1602_v4 }
 0x670   : > { %v958_v39 = vpop.xlane.xlu0 %957 }
 0x671   : > { %v959_v40 = vadd.f32 %v958_v39, %v955_v58 }
 0x673   : > { %961 = vst.msk [vmem:[#allocation3] sm:$0x1] %vm960_vm13, %v959_v40 }
 0x678   : > { %v966_v41 = vpop.permute.xlu0 %965 }
 0x679   : > { %v971_v42 = vrot.slane %v966_v41, %v2145_v28 }
 0x67a   : > { %v1028_v51 = vld [vmem:[#allocation3] sm:$0x1] (!%p1331_p4) }
 0x67b   : > { %v972_v44 = vmul.f32 %v971_v42, %v962_v43  ;;  %1603 = vrcp.f32 (!%p1331_p4), %v1028_v51 }
 0x685   : > { %v1604_v57 = vpop.eup (!%p1331_p4), %1603 }
 0x686   : > { %v1030_v60 = vmul.f32 (!%p1331_p4), %v1604_v57, %v1028_v51 }
 0x688   : > { %v1031_v61 = vsub.f32 (!%p1331_p4), 2.0, %v1030_v60 }
 0x68a   : > { %v1032_v63 = vmul.f32 (!%p1331_p4), %v1604_v57, %v1031_v61 }
 0x68c   : > { %1036 = vperm.xlu0 (!%p1331_p4), %1593, %v1032_v63   ;;  %v1168_v0 = vrot.slane (!%p1331_p4), %v1032_v63, %v2145_v28 }
 0x68e   : > { %1170 = vperm.xlu1 (!%p1331_p4), %1594, %v1168_v0  }
 0x690   : > { %1159 = vperm.xlu0 (!%p1331_p4), %1593, %v1340_v1  }
 0x6b4   : > { %1027 = sbr.rel (%p1331_p4) target bundleno = 2025 (0x7e9), region = 80 }
 0x6b7   : > { %v1015_v45 = vpop.f32.mrb[8].mxu0 }
 0x6b8   : > { %v1021_v46 = vadd.f32 %v1015_v45, %v972_v44  ;;  %v1431_v48 = vpop.f32.mrb[9].mxu0 }
 0x6b9   : > { %v1018_v49 = vpop.f32.mrb[10].mxu0 }
 0x6ba   : > { %1022 = vst [vmem:[#allocation4] sm:$0x1] %v1021_v46  ;;  %v1432_v50 = vpop.f32.mrb[11].mxu0 }
 0x6c1   : > { %v1033_v5 = vld [vmem:[#allocation4] sm:$0x1] }
 0x70b   : > { %v1037_v6 = vpop.permute.xlu0 %1036 }
 0x70c   : > { %v1042_v7 = vrot.slane %v1037_v6, %v2145_v28 }
 0x70d   : > { %v1171_v14 = vpop.permute.xlu1 %1170 }
 0x70e   : > { %v1043_v9 = vmul.f32 %v1042_v7, %v1033_v5 }
 0x70f   : > { %v1160_v10 = vpop.permute.xlu0 %1159 }
 0x710   : > { %v1044_v11 = vpack.c.bf16 %v1043_v9, %v1043_v9  ;;  %v1162_v12 = vsub.f32 %v1151_v8, %v1160_v10 }
 0x712   : > { %v1163_v13 = vmul.f32 1.442695, %v1162_v12  ;;  %1450 = vmatmul.mubr.bf16.vlgmr.msra.gmra.mrb[0].mxu0 %v1044_v11 }
 0x714   : > { %1605 = vpow2.f32 %v1163_v13 }
 0x71e   : > { %v1606_v15 = vpop.eup %1605 }
 0x71f   : > { %v1173_v16 = vmul.f32 %v1606_v15, %v1171_v14 }
 0x721   : > { %1175 = vst.msk [vmem:[#allocation15] sm:$0x3] %vm1174_vm0, %v1173_v16 }
 0x7e5   : > { %v1144_v18 = vpop.f32.mrb[0].mxu0 }
 0x7e6   : > { %v1145_v47 = vadd.f32 %v1144_v18, %v1061_v17  ;;  %v1451_v19 = vpop.f32.mrb[1].mxu0 }
 0x7e7   : > { %v1147_v20 = vpop.f32.mrb[2].mxu0 }
 0x7e8   : > { %1150 = vst [vmem:[#allocation14] sm:$0x1] %v1145_v47  ;;  %v1452_v21 = vpop.f32.mrb[3].mxu0 }
 0x7e9 PF: > { %p1496_p5 = scmp.eq.s32.totalorder %s1917_s17, 1  ;;  %s1841_s12 = smov [#allocation14]  }
 0x7ea   : > { %s1183_s29 = sshll.u32 %s1841_s12, 4  ;;  %s1842_s30 = smov [#allocation15]   ;;  %s1184_s29 = int_to_ptr.vmem [resolvable:$true] %s1183_s29 }
 0x7eb   : > { %s1194_s9 = sshll.u32 %s1842_s30, 4  ;;  %s1721_s25 = scalar_lea.vmem %s1184_s29, 16  ;;  %s1195_s9 = int_to_ptr.vmem [resolvable:$true] %s1194_s9 }
 0x7ec   : > { %p1722_p6 = scmp.ne.s32.totalorder %s1184_s29, %s1721_s25  ;;  %s1727_s26 = scalar_lea.vmem %s1184_s29, 32 }
 0x7ed   : > { %p1728_p0 = scmp.lt.s32.totalorder %s1184_s29, %s1184_s29  ;;  %p1729_p2 = scmp.lt.s32.totalorder %s1727_s26, %s1721_s25 }
 0x7ee   : > { %p1723_p9 = pnand %p1722_p6, %p1496_p5 }
 0x7ef   : > { %p1730_p11 = por %p1729_p2, %p1728_p0 }
 0x7f0   : > { %p1724_p12 = pneg %p1723_p9 }
 0x7f2   : > { %p1731_p13 = pnand %p1730_p11, %p1724_p12 }
 0x7f4   : > { %1734 = shalt.err (!%p1731_p13)
}
 0x7f5   : > { %s2253_s19 = sld [smem:[#allocation23_spill]] }
 0x7fb   : > { %s1735_s20 = scalar_lea.hbm %s2253_s19, 16 }
 0x7fc   : > { %p1736_p3 = scmp.ne.s32.totalorder %s2253_s19, %s1735_s20  ;;  %p1741_p10 = scmp.lt.u32.totalorder %s1735_s20, %s2253_s19 }
 0x7fe   : > { %p1737_p7 = pnand %p1736_p3, %p1496_p5 }
 0x800   : > { %p1738_p8 = pneg %p1737_p7 }
 0x802   : > { %p1743_p1 = pnand %p1741_p10, %p1738_p8 }
 0x804   : > { %1746 = shalt.err (!%p1743_p1)
}
 0x805   : > { %1468 = dma.vmem_to_hbm [thread:$0]  (%p1496_p5), %s1184_s29, 16, %s2253_s19, [#allocation8]  }
 0x806   : > { %s1747_s16 = scalar_lea.vmem %s1195_s9, 32  ;;  %p1754_p12 = scmp.lt.s32.totalorder %s1195_s9, %s1195_s9 }
 0x807   : > { %p1748_p4 = scmp.ne.s32.totalorder %s1195_s9, %s1747_s16  ;;  %p1755_p0 = scmp.lt.s32.totalorder %s1747_s16, %s1747_s16 }
 0x809   : > { %p1749_p6 = pnand %p1748_p4, %p1496_p5  ;;  %p1756_p2 = por %p1755_p0, %p1754_p12 }
 0x80b   : > { %p1750_p9 = pneg %p1749_p6 }
 0x80d   : > { %p1757_p11 = pnand %p1756_p2, %p1750_p9 }
 0x80f   : > { %1760 = shalt.err (!%p1757_p11)
}
 0x810   : > { %s2254_s30 = sld [smem:[#allocation24_spill]] }
 0x816   : > { %s1761_s25 = scalar_lea.hbm %s2254_s30, 32 }
 0x817   : > { %p1762_p13 = scmp.ne.s32.totalorder %s2254_s30, %s1761_s25  ;;  %p1767_p8 = scmp.lt.u32.totalorder %s1761_s25, %s2254_s30 }
 0x819   : > { %p1763_p3 = pnand %p1762_p13, %p1496_p5 }
 0x81b   : > { %p1764_p7 = pneg %p1763_p3 }
 0x81d   : > { %p1769_p10 = pnand %p1767_p8, %p1764_p7 }
 0x81f   : > { %1772 = shalt.err (!%p1769_p10)
}
 0x820   : > { %1470 = dma.vmem_to_hbm [thread:$0]  (%p1496_p5), %s1195_s9, 32, %s2254_s30, [#allocation16]  }
 0x821   : > { %1802 = dma.done.wait (%p1496_p5), [#allocation8], 16  }
 0x822   : > { %1804 = vsyncadd (%p1496_p5), [#allocation8], 4294967280 }
 0x823   : > { %1806 = dma.done.wait (%p1496_p5), [#allocation16], 32  }
 0x824   : > { %1808 = vsyncadd (%p1496_p5), [#allocation16], 4294967264 }
 0x825 PF: > { %p25_p1 = scmp.ge.s32.totalorder %s1995_s11, 4   ;;  %s2255_s13 = smov %s1815_s14 }
 0x826   : > { %s2256_s14 = smov %s1819_s15  ;;  %s2257_s15 = smov %s2026_s22 }
 0x827   : > { %s2258_s16 = smov %s1995_s11  ;;  %27 = sbr.rel (!%p25_p1) target bundleno = 11 (0xb), region = 122 }
 0x82e   :  { %1211 = vsyncpa [#allocation7], 1 }
 0x82f   :  { %1213 = vsyncpa [#allocation7 + $0x1], 1 }
 0x830   :  { %1214 = vsyncpa [#allocation10], 1 }
 0x831   :  { %1215 = vsyncpa [#allocation13], 1 }
 0x832   :  { %1216 = vsyncpa [#allocation8], 1 }
 0x833   :  { %1218 = vsyncpa [#allocation8 + $0x1], 1 }
 0x834   :  { %1219 = vsyncpa [#allocation16], 1 }

</bundles_post_ra>
